<compile_context>
chip_gen: v7x
topology: tpu7x:2x2x1
jax: 0.10.0
libtpu: 0.0.40
codegen_flags: <defaults>
</compile_context>

<pallas_src>
import functools
import math

import jax
import jax.numpy as jnp
from jax import lax
from jax.experimental import pallas as pl
from jax.experimental.pallas import tpu as pltpu
import jax.scipy.linalg as jsl
import numpy as np


# --------------------------------------------------------------------------
# Pallas kernel 1: tiled RBF kernel matrix  K(A, B) (+ noise_sq * I on the
# diagonal blocks of a square (train, train) call).
# Hyperparameters are baked in as compile-time constants (plain Python floats
# on the module), so no SMEM scalar traffic in the hot loop.
# --------------------------------------------------------------------------
def _rbf_block_kernel(a_ref, b_ref, out_ref, *, inv_scale, variance, noise_sq,
                      add_noise):
    # a block: (tm, D), b block: (tn, D) -- scale once per block (tm*D + tn*D
    # multiplies) instead of per output element.
    a = a_ref[...].astype(jnp.float32) * inv_scale
    b = b_ref[...].astype(jnp.float32) * inv_scale
    tm = a.shape[0]
    tn = b.shape[0]

    a2 = jnp.sum(a * a, axis=1, keepdims=True)          # (tm, 1)
    b2 = jnp.sum(b * b, axis=1, keepdims=True)          # (tn, 1)

    # Fold the norms into the MXU contraction (width D+2): the (tm, tn) result
    # of u @ w^T is directly  2 a.b - ||a||^2 - ||b||^2 , i.e. the exponent.
    # This removes ~2 VALU ops per output element and the (tn,1)->(1,tn)
    # relayout of b2 — matters on v7x where HBM stops being the bottleneck.
    u = jnp.concatenate([2.0 * a, -a2, jnp.ones((tm, 1), jnp.float32)], axis=1)
    w = jnp.concatenate([b, jnp.ones((tn, 1), jnp.float32), -b2], axis=1)
    expo = lax.dot_general(u, w, (((1,), (1,)), ((), ())),
                           preferred_element_type=jnp.float32)
    expo = jnp.minimum(expo, 0.0)                        # exact-zero diagonal
    kvals = variance * jnp.exp(expo)                     # exp -> EUP slot

    if add_noise:
        # Only square, identically tiled (train, train) calls take this path;
        # with tm == tn the diagonal lives exclusively in i == j blocks, where
        # the absolute row/col test reduces to the local iota test.
        is_diag = pl.program_id(0) == pl.program_id(1)

        @pl.when(is_diag)
        def _():
            row = lax.broadcasted_iota(jnp.int32, kvals.shape, 0)
            col = lax.broadcasted_iota(jnp.int32, kvals.shape, 1)
            out_ref[...] = kvals + jnp.where(row == col, noise_sq, 0.0)

        @pl.when(jnp.logical_not(is_diag))
        def _():
            out_ref[...] = kvals                         # single store per tile
    else:
        out_ref[...] = kvals


def rbf_kernel_matrix(a, b, lengthscale, variance, noise_sq=0.0,
                      *, tile_m=512, tile_n=1024):
    M, D = a.shape
    N = b.shape[0]
    add_noise = float(noise_sq) != 0.0

    tm = min(tile_m, M)
    tn = min(tile_n, N)
    if add_noise:
        # Diagonal-noise path requires a square, aligned tiling.
        assert M == N, "noise is only added to the square (train, train) kernel"
        tm = tn = min(tm, tn)

    kernel = functools.partial(
        _rbf_block_kernel,
        inv_scale=float(1.0 / (math.sqrt(2.0) * float(lengthscale))),
        variance=float(variance),
        noise_sq=float(noise_sq),
        add_noise=add_noise,
    )

    grid = (pl.cdiv(M, tm), pl.cdiv(N, tn))
    return pl.pallas_call(
        kernel,
        out_shape=jax.ShapeDtypeStruct((M, N), jnp.float32),
        grid=grid,
        in_specs=[
            pl.BlockSpec((tm, D), lambda i, j: (i, 0)),
            pl.BlockSpec((tn, D), lambda i, j: (j, 0)),
        ],
        out_specs=pl.BlockSpec((tm, tn), lambda i, j: (i, j)),
        compiler_params=pltpu.CompilerParams(
            dimension_semantics=("parallel", "parallel"),
            vmem_limit_bytes=32 * 1024 * 1024,
        ),
    )(a.astype(jnp.float32), b.astype(jnp.float32))


# --------------------------------------------------------------------------
# Pallas kernel 2: posterior mean + posterior variance (diag).
#   mu       = v^T @ w       with v = L^{-1} K_s  (N_train, N_test)
#                                 w = L^{-1} y    lane-dense as (P, N_train)
#   cov_diag = variance - sum(v*v, axis=0)        (diag(K_ss) == variance)
# Tiled over N_test (parallel) AND N_train (reduction, last axis, arbitrary),
# so VMEM use is bounded for any N_train (fits v7x's 64 MiB VMEM).
# Lane-dense outputs: mu as (P, N_test), cov as (1, N_test).
# --------------------------------------------------------------------------
def _posterior_block_kernel(v_ref, w_ref, mu_ref, cov_ref, mu_acc, sq_acc,
                            *, variance):
    kk = pl.program_id(1)

    @pl.when(kk == 0)
    def _():
        mu_acc[...] = jnp.zeros_like(mu_acc)
        sq_acc[...] = jnp.zeros_like(sq_acc)

    v = v_ref[...]          # (tk, tn)
    w = w_ref[...]          # (P, tk)  lane-dense weight block
    tk = v.shape[0]

    # mu partial: (P, tk) @ (tk, tn) -> (P, tn) on the MXU.
    mu_acc[...] += lax.dot_general(w, v, (((1,), (0,)), ((), ())),
                                   preferred_element_type=jnp.float32)
    # sum(v*v) partial: reduce over sublanes on the MXU (ones-row contraction)
    # instead of the VPU.
    sq_acc[...] += lax.dot_general(jnp.ones((1, tk), jnp.float32), v * v,
                                   (((1,), (0,)), ((), ())),
                                   preferred_element_type=jnp.float32)

    @pl.when(kk == pl.num_programs(1) - 1)
    def _():
        mu_ref[...] = mu_acc[...]
        cov_ref[...] = variance - sq_acc[...]


def gp_posterior(v, w, variance, *, tile_n=512, tile_k=1024):
    """v: (N_train, N_test) = L^{-1} K_s ;  w: (N_train, P) = L^{-1} y."""
    Ntr, Nte = v.shape
    P = w.shape[1]
    tn = min(tile_n, Nte)
    tk = min(tile_k, Ntr)

    # Zero-pad the reduction dim so partial tiles cannot corrupt the
    # accumulation (zeros contribute nothing to mu or sum(v*v)).
    Ntr_pad = pl.cdiv(Ntr, tk) * tk
    if Ntr_pad != Ntr:
        v = jnp.pad(v, ((0, Ntr_pad - Ntr), (0, 0)))
        w = jnp.pad(w, ((0, Ntr_pad - Ntr), (0, 0)))
    w_t = jnp.transpose(w)                               # (P, Ntr_pad) lane-dense

    kernel = functools.partial(_posterior_block_kernel, variance=float(variance))
    mu_t, cov_row = pl.pallas_call(
        kernel,
        out_shape=(
            jax.ShapeDtypeStruct((P, Nte), jnp.float32),
            jax.ShapeDtypeStruct((1, Nte), jnp.float32),
        ),
        grid=(pl.cdiv(Nte, tn), Ntr_pad // tk),          # reduction axis LAST
        in_specs=[
            pl.BlockSpec((tk, tn), lambda j, k: (k, j)),
            pl.BlockSpec((P, tk), lambda j, k: (0, k)),
        ],
        out_specs=(
            pl.BlockSpec((P, tn), lambda j, k: (0, j)),
            pl.BlockSpec((1, tn), lambda j, k: (0, j)),
        ),
        scratch_shapes=[
            pltpu.VMEM((P, tn), jnp.float32),
            pltpu.VMEM((1, tn), jnp.float32),
        ],
        compiler_params=pltpu.CompilerParams(
            dimension_semantics=("parallel", "arbitrary"),
            vmem_limit_bytes=32 * 1024 * 1024,
        ),
    )(v.astype(jnp.float32), w_t.astype(jnp.float32))

    mu = mu_t.T                                          # (N_test, P)
    cov = jnp.broadcast_to(cov_row.T, (Nte, P))          # expand_as(mu)
    return mu, cov


# --------------------------------------------------------------------------
# CIGP module (forward pass)
# --------------------------------------------------------------------------
class CIGP:
    def __init__(self, lengthscale=1.0, variance=1.0, noise_variance=0.1):
        # deterministic "parameter" initialization (no checkpoint loading)
        self.lengthscale = float(lengthscale)
        self.variance = float(variance)
        self.noise_variance = float(noise_variance)

    def forward(self, x_train, y_train, x_test):
        noise_sq = self.noise_variance ** 2

        # K = kernel(x_train, x_train) + noise_variance^2 * I   (Pallas, tiled)
        K = rbf_kernel_matrix(x_train, x_train, self.lengthscale, self.variance,
                              noise_sq)
        # K_s = kernel(x_train, x_test)                          (Pallas, tiled)
        K_s = rbf_kernel_matrix(x_train, x_test, self.lengthscale, self.variance,
                                0.0)
        # K_ss is never built: for an RBF kernel diag(K_ss) == variance, which
        # is all the forward pass consumes (cov.diag()).

        # Cholesky-based solves stay in plain JAX (sequential, no Pallas path).
        # TODO(synk): no clean Pallas equivalent for cholesky/solve_triangular.
        L = jsl.cholesky(K, lower=True)
        w = jsl.solve_triangular(L, y_train, lower=True)          # L^{-1} y
        v = jsl.solve_triangular(L, K_s, lower=True)              # L^{-1} K_s

        # mu = v^T (L^{-1} y) == K_s^T K^{-1} y ; cov = diag(K_ss - v^T v)
        mu, cov = gp_posterior(v, w, self.variance)
        return jnp.squeeze(mu), cov


# --------------------------------------------------------------------------
def _reference_forward(model, x_train, y_train, x_test):
    """Pure-JAX reference for a sanity check (mirrors the PyTorch module)."""
    def rbf(a, b):
        d2 = (jnp.sum(a * a, 1)[:, None] + jnp.sum(b * b, 1)[None, :]
              - 2.0 * a @ b.T)
        d2 = jnp.maximum(d2, 0.0)
        return model.variance * jnp.exp(-0.5 * d2 / model.lengthscale ** 2)

    n = x_train.shape[0]
    K = rbf(x_train, x_train) + (model.noise_variance ** 2) * jnp.eye(n)
    K_s = rbf(x_train, x_test)
    K_ss = rbf(x_test, x_test)
    L = jsl.cholesky(K, lower=True)
    Alpha = jsl.cho_solve((L, True), y_train)
    v = jsl.solve_triangular(L, K_s, lower=True)
    mu = K_s.T @ Alpha
    cov = K_ss - v.T @ v
    cov = jnp.broadcast_to(jnp.diag(cov)[:, None], mu.shape)
    return jnp.squeeze(mu), cov


if __name__ == "__main__":
    key = jax.random.PRNGKey(0)
    k1, k2, k3 = jax.random.split(key, 3)

    N_train, N_test, D, P = 32, 16, 4, 1
    x_train = jax.random.normal(k1, (N_train, D), jnp.float32)
    x_test = jax.random.normal(k2, (N_test, D), jnp.float32)
    y_train = jax.random.normal(k3, (N_train, P), jnp.float32)

    model = CIGP(lengthscale=1.0, variance=1.0, noise_variance=0.1)

    mu, cov = model.forward(x_train, y_train, x_test)
    mu = jax.block_until_ready(mu)
    cov = jax.block_until_ready(cov)

    # sanity check against pure-JAX reference
    mu_ref, cov_ref = _reference_forward(model, x_train, y_train, x_test)
    np.testing.assert_allclose(np.asarray(mu), np.asarray(mu_ref),
                               atol=1e-4, rtol=1e-4)
    np.testing.assert_allclose(np.asarray(cov), np.asarray(cov_ref),
                               atol=1e-4, rtol=1e-4)

    assert mu.shape == (N_test,)
    assert cov.shape == (N_test, P)
    print("KERNEL_OK")
</pallas_src>

<mosaic_0001>
module attributes {stable_mosaic.version = 11 : i64} {
  func.func @_rbf_block_kernel(%arg0: i32, %arg1: i32, %arg2: memref<32x4xf32, #tpu.memory_space<vmem>>, %arg3: memref<32x4xf32, #tpu.memory_space<vmem>>, %arg4: memref<32x32xf32, #tpu.memory_space<vmem>>) attributes {dimension_semantics = [#tpu.dimension_semantics<parallel>, #tpu.dimension_semantics<parallel>], iteration_bounds = array<i64: 1, 1>, scalar_prefetch = 0 : i64, scratch_operands = 0 : i64, tpu.core_type = #tpu.core_type<tc>, window_params = [{transform_indices = @transform_0, window_bounds = array<i64: 32, 4>}, {transform_indices = @transform_1, window_bounds = array<i64: 32, 4>}, {transform_indices = @transform_2, window_bounds = array<i64: 32, 32>}]} {
    %c0 = arith.constant 0 : index
    %c0_0 = arith.constant 0 : index
    %0 = vector.load %arg2[%c0, %c0_0] : memref<32x4xf32, #tpu.memory_space<vmem>>, vector<32x4xf32>
    %cst = arith.constant 0.707106769 : f32
    %1 = vector.broadcast %cst : f32 to vector<32x4xf32>
    %2 = arith.mulf %0, %1 : vector<32x4xf32>
    %c0_1 = arith.constant 0 : index
    %c0_2 = arith.constant 0 : index
    %3 = vector.load %arg3[%c0_1, %c0_2] : memref<32x4xf32, #tpu.memory_space<vmem>>, vector<32x4xf32>
    %cst_3 = arith.constant 0.707106769 : f32
    %4 = vector.broadcast %cst_3 : f32 to vector<32x4xf32>
    %5 = arith.mulf %3, %4 : vector<32x4xf32>
    %6 = arith.mulf %2, %2 : vector<32x4xf32>
    %cst_4 = arith.constant dense<0.000000e+00> : vector<32xf32>
    %7 = vector.multi_reduction <add>, %6, %cst_4 [1] : vector<32x4xf32> to vector<32xf32>
    %8 = vector.shape_cast %7 : vector<32xf32> to vector<32x1xf32>
    %9 = arith.mulf %5, %5 : vector<32x4xf32>
    %cst_5 = arith.constant dense<0.000000e+00> : vector<32xf32>
    %10 = vector.multi_reduction <add>, %9, %cst_5 [1] : vector<32x4xf32> to vector<32xf32>
    %11 = vector.shape_cast %10 : vector<32xf32> to vector<32x1xf32>
    %cst_6 = arith.constant 2.000000e+00 : f32
    %12 = vector.broadcast %cst_6 : f32 to vector<32x4xf32>
    %13 = arith.mulf %12, %2 : vector<32x4xf32>
    %cst_7 = arith.constant 0.000000e+00 : f32
    %14 = vector.broadcast %cst_7 : f32 to vector<32x1xf32>
    %15 = arith.subf %14, %8 : vector<32x1xf32>
    %cst_8 = arith.constant 1.000000e+00 : f32
    %16 = vector.broadcast %cst_8 : f32 to vector<32x1xf32>
    %17 = tpu.concatenate %13, %15, %16 in 1 : vector<32x4xf32>, vector<32x1xf32>, vector<32x1xf32> -> vector<32x6xf32>
    %cst_9 = arith.constant 1.000000e+00 : f32
    %18 = vector.broadcast %cst_9 : f32 to vector<32x1xf32>
    %cst_10 = arith.constant 0.000000e+00 : f32
    %19 = vector.broadcast %cst_10 : f32 to vector<32x1xf32>
    %20 = arith.subf %19, %11 : vector<32x1xf32>
    %21 = tpu.concatenate %5, %18, %20 in 1 : vector<32x4xf32>, vector<32x1xf32>, vector<32x1xf32> -> vector<32x6xf32>
    %cst_11 = arith.constant dense<0.000000e+00> : vector<32x32xf32>
    %22 = tpu.matmul %17, %21, %cst_11 {dimension_numbers = #tpu.dot_dimension_numbers<[1], [1], [0], [0], [0, 0, 1, 0], [], []>} : vector<32x6xf32>, vector<32x6xf32>, vector<32x32xf32> -> vector<32x32xf32>
    %cst_12 = arith.constant 0.000000e+00 : f32
    %23 = vector.broadcast %cst_12 : f32 to vector<32x32xf32>
    %24 = arith.minimumf %22, %23 : vector<32x32xf32>
    %25 = math.exp %24 : vector<32x32xf32>
    %cst_13 = arith.constant 1.000000e+00 : f32
    %26 = vector.broadcast %cst_13 : f32 to vector<32x32xf32>
    %27 = arith.mulf %26, %25 : vector<32x32xf32>
    %28 = arith.cmpi eq, %arg0, %arg1 : i32
    %29 = arith.extui %28 : i1 to i32
    %c0_i32 = arith.constant 0 : i32
    %30 = arith.cmpi ne, %29, %c0_i32 : i32
    scf.if %30 {
      %34 = tpu.iota {dimensions = array<i32: 0>} : vector<32x32xi32>
      %35 = tpu.iota {dimensions = array<i32: 1>} : vector<32x32xi32>
      %36 = arith.cmpi eq, %34, %35 : vector<32x32xi32>
      %cst_15 = arith.constant 0.00999999977 : f32
      %cst_16 = arith.constant 0.000000e+00 : f32
      %37 = vector.broadcast %cst_15 : f32 to vector<32x32xf32>
      %38 = vector.broadcast %cst_16 : f32 to vector<32x32xf32>
      %39 = arith.select %36, %37, %38 : vector<32x32xi1>, vector<32x32xf32>
      %40 = arith.addf %27, %39 : vector<32x32xf32>
      %c0_17 = arith.constant 0 : index
      %c0_18 = arith.constant 0 : index
      %41 = vector.load %arg4[%c0_17, %c0_18] : memref<32x32xf32, #tpu.memory_space<vmem>>, vector<32x32xf32>
      tpu.vector_store %arg4[%c0_17, %c0_18], %40 {strides = array<i32>} : memref<32x32xf32, #tpu.memory_space<vmem>>, vector<32x32xf32>,
    } else {
    }
    %true = arith.constant true
    %31 = arith.xori %28, %true : i1
    %32 = arith.extui %31 : i1 to i32
    %c0_i32_14 = arith.constant 0 : i32
    %33 = arith.cmpi ne, %32, %c0_i32_14 : i32
    scf.if %33 {
      %c0_15 = arith.constant 0 : index
      %c0_16 = arith.constant 0 : index
      %34 = vector.load %arg4[%c0_15, %c0_16] : memref<32x32xf32, #tpu.memory_space<vmem>>, vector<32x32xf32>
      tpu.vector_store %arg4[%c0_15, %c0_16], %27 {strides = array<i32>} : memref<32x32xf32, #tpu.memory_space<vmem>>, vector<32x32xf32>,
    } else {
    }
    return
  }
  func.func @transform_0(%arg0: i32, %arg1: i32) -> (i32, i32) {
    %c0_i32 = arith.constant 0 : i32
    %c0_i32_0 = arith.constant 0 : i32
    return %arg0, %c0_i32 : i32, i32
  }
  func.func @transform_1(%arg0: i32, %arg1: i32) -> (i32, i32) {
    %c0_i32 = arith.constant 0 : i32
    %c0_i32_0 = arith.constant 0 : i32
    return %arg1, %c0_i32 : i32, i32
  }
  func.func @transform_2(%arg0: i32, %arg1: i32) -> (i32, i32) {
    %c0_i32 = arith.constant 0 : i32
    return %arg0, %arg1 : i32, i32
  }
}

</mosaic_0001>

<bundles_post_ra>
// kernel: tpu_custom_call.1
= control target key start
LH: loop header
LB: loop body
LE: loop exit
PB: predicated region body
PF: predicated region fallthrough
CT: control target
= control target key end

     0   :  { %vm32_vm0 = vcmask 31744   ;;  %s456_s0 = inlined_call_operand.vmem [shape: f32[32,4], index: 0, kind: input, shape index: {}]   ;;  %s457_s1 = inlined_call_operand.vmem [shape: f32[32,4], index: 1, kind: input, shape index: {}]   ;;  %s458_s2 = inlined_call_operand.hbm [shape: f32[32,32], index: 2, kind: output, shape index: {}]  }
   0x1   :  { %v20_v0 = vld [vmem:[%s457_s1] sm:$0xff]  ;;  %v22_v1 = vld [vmem:[%s457_s1 + $0x10] sm:$0xff]  ;;  %v21_v2 = vld [vmem:[%s457_s1 + $0x8] sm:$0xff] }
   0x2   :  { %v24_v3 = vmul.f32 0.70710677, %v20_v0  ;;  %v26_v4 = vmul.f32 0.70710677, %v22_v1  ;;  %v25_v5 = vmul.f32 0.70710677, %v21_v2 }
   0x3   :  { %v23_v6 = vld [vmem:[%s457_s1 + $0x18] sm:$0xff]  ;;  %v14_v7 = vld [vmem:[%s456_s0 + $0x10] sm:$0xff]  ;;  %v12_v8 = vld [vmem:[%s456_s0] sm:$0xff] }
   0x4   :  { %v45_v9 = vmul.f32 %v24_v3, %v24_v3  ;;  %v47_v10 = vmul.f32 %v26_v4, %v26_v4  ;;  %v15_v11 = vld [vmem:[%s456_s0 + $0x18] sm:$0xff] }
   0x5   :  { %7 = vsyncpa [#allocation3], 0  ;;  %v46_v12 = vmul.f32 %v25_v5, %v25_v5  ;;  %v27_v13 = vmul.f32 0.70710677, %v23_v6  ;;  %v18_v14 = vmul.f32 0.70710677, %v14_v7  ;;  %v216_v7 = vlaneseq }
   0x6   :  { %v13_v15 = vld [vmem:[%s456_s0 + $0x8] sm:$0xff]  ;;  %v49_v16 = vsel %vm32_vm0, %v45_v9, 0.0  ;;  %v55_v17 = vsel %vm32_vm0, %v47_v10, 0.0  ;;  %v16_v18 = vmul.f32 0.70710677, %v12_v8  ;;  %v84_v35 = vsel %vm32_vm0, %v26_v4, 1.0 }
   0x7   :  { %50 = vadd.xlane.f32.xlu0 %v49_v16  ;;  %56 = vadd.xlane.f32.xlu1 %v55_v17  ;;  %v48_v19 = vmul.f32 %v27_v13, %v27_v13  ;;  %v19_v20 = vmul.f32 0.70710677, %v15_v11  ;;  %v52_v21 = vsel %vm32_vm0, %v46_v12, 0.0  ;;  %v30_v22 = vmul.f32 %v18_v14, %v18_v14  ;;  %s348_s0 = smov [#allocation2]  }
   0x8   :  { %v28_v23 = vmul.f32 %v16_v18, %v16_v18  ;;  %v17_v24 = vmul.f32 0.70710677, %v13_v15  ;;  %vm73_vm1 = vcmask 39936   ;;  %v82_v37 = vsel %vm32_vm0, %v24_v3, 1.0  ;;  %s254_s24 = sshll.u32 %s348_s0, 4  ;;  %s255_s24 = int_to_ptr.vmem [resolvable:$true] %s254_s24 }
   0x9   :  { %v58_v25 = vsel %vm32_vm0, %v48_v19, 0.0  ;;  %v39_v26 = vsel %vm32_vm0, %v30_v22, 0.0  ;;  %v31_v28 = vmul.f32 %v19_v20, %v19_v20  ;;  %v83_v38 = vsel %vm32_vm0, %v25_v5, 1.0  ;;  %s323_s25 = scalar_lea.vmem %s255_s24, 512  ;;  %p328_p1 = scmp.lt.s32.totalorder %s255_s24, %s255_s24 }
   0xa   :  { %v33_v27 = vsel %vm32_vm0, %v28_v23, 0.0  ;;  %v29_v29 = vmul.f32 %v17_v24, %v17_v24  ;;  %v85_v39 = vsel %vm32_vm0, %v27_v13, 1.0  ;;  %vm90_vm2 = vcmask 48128   ;;  %p324_p0 = scmp.ne.s32.totalorder %s255_s24, %s323_s25  ;;  %p329_p2 = scmp.lt.s32.totalorder %s323_s25, %s323_s25 }
   0xb   :  { %53 = vadd.xlane.f32.xlu0 %v52_v21  ;;  %59 = vadd.xlane.f32.xlu1 %v58_v25  ;;  %v42_v30 = vsel %vm32_vm0, %v31_v28, 0.0  ;;  %v61_v45 = vmul.f32 2.0, %v16_v18  ;;  %vm408_vm3 = vmpackc.low %vm90_vm2, %vm90_vm2  ;;  %v63_v50 = vmul.f32 2.0, %v18_v14  ;;  %v64_v63 = vmul.f32 2.0, %v19_v20 }
   0xc   :  { %v36_v31 = vsel %vm32_vm0, %v29_v29, 0.0  ;;  %v62_v0 = vmul.f32 2.0, %v17_v24  ;;  %v217_v14 = vshrl.u32 %v216_v7, 7  ;;  %v222_v22 = vand.u32 127, %v216_v7  ;;  %p330_p3 = por %p329_p2, %p328_p1 }
   0xd   :  { %v347_v25 = vmov 0.0   ;;  %vm235_vm8 = vcmask 261120  }
   0xe   :  { %v218_v21 = vadd.s32 8, %v217_v14  ;;  %v220_v23 = vadd.s32 24, %v217_v14  ;;  %v219_v24 = vadd.s32 16, %v217_v14  ;;  %vm223_vm6 = vcmp.eq.s32.totalorder %v217_v14, %v222_v22  ;;  %p331_p4 = pnand %p330_p3, %p324_p0 }
   0xf   :  { %40 = vadd.xlane.f32.xlu1 %v39_v26  ;;  %34 = vadd.xlane.f32.xlu0 %v33_v27  ;;  %v227_v29 = vsel %vm223_vm6, 0.01, %v347_v25 }
  0x10   :  { %vm224_vm4 = vcmp.eq.s32.totalorder %v218_v21, %v222_v22  ;;  %vm226_vm5 = vcmp.eq.s32.totalorder %v220_v23, %v222_v22  ;;  %vm225_vm7 = vcmp.eq.s32.totalorder %v219_v24, %v222_v22 }
  0x11   :  { %v228_v26 = vsel %vm224_vm4, 0.01, %v347_v25  ;;  %v230_v27 = vsel %vm226_vm5, 0.01, %v347_v25 }
  0x13   :  { %43 = vadd.xlane.f32.xlu1 %v42_v30  ;;  %37 = vadd.xlane.f32.xlu0 %v36_v31 }
  0x94   :  { %v51_v32 = vpop.xlane.xlu0 %50  ;;  %v57_v33 = vpop.xlane.xlu1 %56 }
  0x95   :  { %v80_v34 = vsub.f32 0.0, %v57_v33  ;;  %v78_v36 = vsub.f32 0.0, %v51_v32  ;;  %v229_v32 = vsel %vm225_vm7, 0.01, %v347_v25 }
  0x97   :  { %v88_v42 = vsel %vm73_vm1, %v84_v35, %v80_v34  ;;  %v86_v46 = vsel %vm73_vm1, %v82_v37, %v78_v36 }
  0x98   :  { %v54_v40 = vpop.xlane.xlu0 %53  ;;  %v60_v41 = vpop.xlane.xlu1 %59 }
  0x99   :  { %v79_v43 = vsub.f32 0.0, %v54_v40  ;;  %v81_v44 = vsub.f32 0.0, %v60_v41 }
  0x9b   :  { %v87_v47 = vsel %vm73_vm1, %v83_v38, %v79_v43  ;;  %v89_v48 = vsel %vm73_vm1, %v85_v39, %v81_v44 }
  0x9c   :  { %v295_v51 = vpack.c.bf16 %v87_v47, %v86_v46  ;;  %v301_v52 = vpack.c.bf16 %v89_v48, %v88_v42  ;;  %v41_v53 = vpop.xlane.xlu1 %40  ;;  %v35_v54 = vpop.xlane.xlu0 %34 }
  0x9d   :  { %v67_v55 = vsub.f32 0.0, %v41_v53  ;;  %v65_v56 = vsub.f32 0.0, %v35_v54 }
  0x9e   :  { %297 = vmatprep.subr.msk.bf16.mxu0 %vm408_vm3, %v295_v51  ;;  %307 = vmatprep.subr.msk.bf16.mxu1 %vm408_vm3, %v295_v51 }
  0x9f   :  { %300 = vmatpush3.bf16.xpose.msk.msra.mxu0 %vm408_vm3, %v295_v51  ;;  %309 = vmatpush3.bf16.xpose.msk.msra.mxu1 %vm408_vm3, %v295_v51  ;;  %v69_v57 = vsel %vm32_vm0, %v61_v45, %v65_v56  ;;  %v71_v58 = vsel %vm32_vm0, %v63_v50, %v67_v55 }
  0xa0   :  { %303 = vmatprep.subr.msk.bf16.mxu0 %vm408_vm3, %v301_v52  ;;  %308 = vmatprep.subr.msk.bf16.mxu1 %vm408_vm3, %v301_v52  ;;  %v74_v59 = vsel %vm73_vm1, %v69_v57, 1.0  ;;  %v76_v60 = vsel %vm73_vm1, %v71_v58, 1.0  ;;  %v44_v61 = vpop.xlane.xlu1 %43  ;;  %v38_v62 = vpop.xlane.xlu0 %37 }
  0xa1   :  { %289 = vmatprep.mubr.msk.f32.mxu0 %vm90_vm2, %v74_v59  ;;  %292 = vmatprep.mubr.msk.f32.mxu1 %vm90_vm2, %v76_v60  ;;  %v68_v1 = vsub.f32 0.0, %v44_v61  ;;  %v66_v2 = vsub.f32 0.0, %v38_v62 }
  0xa3   :  { %v72_v3 = vsel %vm32_vm0, %v64_v63, %v68_v1  ;;  %v70_v4 = vsel %vm32_vm0, %v62_v0, %v66_v2 }
  0xa4   :  { %v75_v5 = vsel %vm73_vm1, %v70_v4, 1.0  ;;  %v77_v6 = vsel %vm73_vm1, %v72_v3, 1.0 }
  0xa7   :  { %306 = vmatpush3.bf16.xpose.msk.msra.mxu0 %vm408_vm3, %v301_v52  ;;  %310 = vmatpush3.bf16.xpose.msk.msra.mxu1 %vm408_vm3, %v301_v52 }
  0xae   :  { %290 = vmatmul.mubr.msk.f32.vlgmr.msra.gmra.mrb[0].mxu0 %vm90_vm2, %v75_v5  ;;  %293 = vmatmul.mubr.msk.f32.vlgmr.msra.gmra.mrb[0].mxu1 %vm90_vm2, %v77_v6 }
 0x181   :  { %v291_v8 = vpop.f32.mrb[0].mxu0  ;;  %v294_v9 = vpop.f32.mrb[0].mxu1 }
 0x182   :  { %v201_v10 = vmin.f32 %v291_v8, 0.0  ;;  %v203_v11 = vmin.f32 %v294_v9, 0.0  ;;  %v181_v12 = vpop.f32.mrb[1].mxu0  ;;  %v191_v13 = vpop.f32.mrb[1].mxu1 }
 0x183   :  { %v200_v15 = vmin.f32 %v181_v12, 0.0  ;;  %v202_v16 = vmin.f32 %v191_v13, 0.0 }
 0x184   :  { %v206_v17 = vmul.f32 1.442695, %v201_v10  ;;  %v210_v18 = vmul.f32 1.442695, %v203_v11 }
 0x185   :  { %v204_v19 = vmul.f32 1.442695, %v200_v15  ;;  %v208_v20 = vmul.f32 1.442695, %v202_v16 }
 0x186   :  { %315 = vpow2.f32 %v206_v17 }
 0x187   :  { %317 = vpow2.f32 %v210_v18 }
 0x188   :  { %319 = vpow2.f32 %v204_v19 }
 0x189   :  { %321 = vpow2.f32 %v208_v20 }
 0x190   :  { %v316_v28 = vpop.eup %315 }
 0x191   :  { %v318_v30 = vpop.eup %317  ;;  %v232_v31 = vadd.f32 %v316_v28, %v228_v26 }
 0x192   :  { %v320_v33 = vpop.eup %319  ;;  %v234_v34 = vadd.f32 %v318_v30, %v230_v27 }
 0x193   :  { %v322_v35 = vpop.eup %321  ;;  %237 = vst.msk [vmem:[#allocation2 + $0x8] sm:$0xff] %vm235_vm8, %v232_v31  ;;  %v231_v36 = vadd.f32 %v320_v33, %v227_v29 }
 0x194   :  { %239 = vst.msk [vmem:[#allocation2 + $0x18] sm:$0xff] %vm235_vm8, %v234_v34  ;;  %v233_v37 = vadd.f32 %v322_v35, %v229_v32 }
 0x195   :  { %236 = vst.msk [vmem:[#allocation2] sm:$0xff] %vm235_vm8, %v231_v36 }
 0x196   :  { %238 = vst.msk [vmem:[#allocation2 + $0x10] sm:$0xff] %vm235_vm8, %v233_v37 }
 0x197   :  { %334 = shalt.err (!%p331_p4)
}
 0x198   :  { %s335_s28 = scalar_lea.hbm %s458_s2, 512 }
 0x199   :  { %p336_p5 = scmp.ne.s32.totalorder %s458_s2, %s335_s28  ;;  %p339_p6 = scmp.lt.u32.totalorder %s335_s28, %s458_s2 }
 0x19b   :  { %p341_p7 = pnand %p339_p6, %p336_p5 }
 0x19d   :  { %344 = shalt.err (!%p341_p7)
}
 0x19e   :  { %s349_s5 = smov 128   ;;  %s350_s6 = smov 8  }
 0x19f   :  { %260 = dma.vmem_to_hbm [thread:$0]  %s255_s24, 512, %s458_s2, [#allocation3], %s349_s5, %s349_s5, %s350_s6  }
 0x1a0   :  { %345 = dma.done.wait [#allocation3], 512  }
 0x1a1   :  { %346 = vsyncadd [#allocation3], 4294966784 }
 0x1a2   :  { %264 = vsyncpa [#allocation3], 1 }

</bundles_post_ra>
